<compile_context>
chip_gen: v7x
topology: tpu7x:2x2x1
jax: 0.10.0
libtpu: 0.0.40
codegen_flags: <defaults>
</compile_context>

<pallas_src>
import numpy as np

import jax
import jax.numpy as jnp
from jax import lax
from jax.experimental import pallas as pl
from jax.experimental.pallas import tpu as pltpu

_LANE = 128
_SUBLANE = 8
_TARGET_BLOCK_BYTES = 4 << 20   # ~4 MiB payload per block (v6e/v7x sweet spot)
_MIN_GRID_STEPS = 8             # keep both v7x TensorCores fed
_VMEM_LIMIT_BYTES = 48 << 20    # < 64 MiB physical on v7x, fine on v5e/v6e


def _make_kernel(keep_prob, block_rows, block_cols, use_hw_prng):
    """Build the dropout kernel. All closure constants are Python/numpy scalars."""
    inv_keep = 1.0 / keep_prob
    # keep an element iff random_u32 < keep_prob * 2^32
    thresh = np.uint32(min((1 << 32) - 1, int(keep_prob * float(1 << 32))))
    block_elems = block_rows * block_cols

    if use_hw_prng:
        def kernel(seed_ref, x_ref, o_ref):
            # Independent stream per block: hardware PRNG seeded with
            # (user_seed, program_id) -> safe under "parallel" grid sharding.
            pltpu.prng_seed(seed_ref[0], pl.program_id(0))
            bits = pltpu.bitcast(
                pltpu.prng_random_bits((block_rows, block_cols)), jnp.uint32)
            keep = bits < thresh
            # Scale & select in the native dtype (bf16 stays bf16 on v6e/v7x).
            o_ref[...] = jnp.where(keep, x_ref[...] * inv_keep, 0.0).astype(o_ref.dtype)
        return kernel

    # Fallback (non-TPU backend / interpret mode): stateless counter hash of
    # the global flat element index mixed with the seed (lowbias32 finalizer).
    # TODO(synk): index is uint32 and wraps for tensors > 2^32 elements.
    def kernel(seed_ref, x_ref, o_ref):
        pid = pl.program_id(0).astype(jnp.uint32)
        row = lax.broadcasted_iota(jnp.int32, (block_rows, block_cols), 0).astype(jnp.uint32)
        col = lax.broadcasted_iota(jnp.int32, (block_rows, block_cols), 1).astype(jnp.uint32)
        idx = pid * np.uint32(block_elems) + row * np.uint32(block_cols) + col
        h = idx ^ (seed_ref[0].astype(jnp.uint32) * np.uint32(0x9E3779B9))
        h = h ^ (h >> np.uint32(16))
        h = h * np.uint32(0x7FEB352D)
        h = h ^ (h >> np.uint32(15))
        h = h * np.uint32(0x846CA68B)
        h = h ^ (h >> np.uint32(16))
        keep = h < thresh
        o_ref[...] = jnp.where(keep, x_ref[...] * inv_keep, 0.0).astype(o_ref.dtype)
    return kernel


def _choose_layout(total, hidden, itemsize):
    """Pick a lane-dense (rows, width) layout plus a VMEM-budgeted row tile."""
    # Prefer a width that divides `total` exactly so no padding copy is needed.
    if hidden % _LANE == 0 and _LANE <= hidden <= 16384:
        width = hidden
    elif total % (4 * _LANE) == 0:
        width = 4 * _LANE
    elif total % _LANE == 0:
        width = _LANE
    else:
        width = 4 * _LANE  # rare padded path (size not a multiple of 128)
    rows = pl.cdiv(total, width)

    itemsize = max(int(itemsize), 1)
    # Sublane packing: 8 rows for 32-bit, 16 for 16-bit, 32 for 8-bit dtypes.
    sub = _SUBLANE * max(1, 4 // itemsize)

    # ~4 MiB of payload per block, rounded to the sublane multiple.
    tile_rows = (_TARGET_BLOCK_BYTES // (width * itemsize)) // sub * sub
    tile_rows = max(sub, tile_rows)

    # Keep the grid >= _MIN_GRID_STEPS steps (megacore sharding on v7x).
    cap = pl.cdiv(pl.cdiv(rows, _MIN_GRID_STEPS), sub) * sub
    tile_rows = min(tile_rows, max(sub, cap))

    if rows < tile_rows:
        tile_rows = rows  # full-extent block is always legal
    return width, rows, tile_rows


def dropout_forward(x, *, dropout_rate=0.5, training=True, seed=0, use_hw_prng=None):
    """Matches Dropout.forward: training -> masked & rescaled; eval -> identity."""
    if (not training) or dropout_rate == 0.0:
        return x
    if dropout_rate >= 1.0:
        # PyTorch allows p = 1.0: everything is dropped.
        return jnp.zeros_like(x)

    keep_prob = 1.0 - dropout_rate
    if use_hw_prng is None:
        # Hardware PRNG only lowers through Mosaic; fall back to the counter
        # hash on non-TPU backends (e.g. CPU interpret mode).
        use_hw_prng = jax.default_backend() == "tpu"

    orig_shape = x.shape
    total = x.size
    hidden = orig_shape[-1] if x.ndim >= 1 else 1

    width, rows, tile_rows = _choose_layout(total, hidden, x.dtype.itemsize)
    padded_total = rows * width

    flat = x.reshape(-1)
    if padded_total != total:
        flat = jnp.pad(flat, (0, padded_total - total))
    x2 = flat.reshape(rows, width)

    grid = (pl.cdiv(rows, tile_rows),)
    seed_arr = jnp.asarray([seed], dtype=jnp.int32)

    out2 = pl.pallas_call(
        _make_kernel(keep_prob, tile_rows, width, use_hw_prng),
        out_shape=jax.ShapeDtypeStruct((rows, width), x.dtype),
        grid_spec=pltpu.PrefetchScalarGridSpec(
            num_scalar_prefetch=1,
            grid=grid,
            in_specs=[pl.BlockSpec((tile_rows, width), lambda i, seed: (i, 0))],
            out_specs=pl.BlockSpec((tile_rows, width), lambda i, seed: (i, 0)),
        ),
        compiler_params=pltpu.CompilerParams(
            # Each block (re)seeds its own PRNG stream / hashes global element
            # indices, so grid steps are independent -> shard across TCs.
            dimension_semantics=("parallel",),
            vmem_limit_bytes=_VMEM_LIMIT_BYTES,
        ),
    )(seed_arr, x2)

    if padded_total != total:
        return out2.reshape(-1)[:total].reshape(orig_shape)
    return out2.reshape(orig_shape)


if __name__ == "__main__":
    key = jax.random.PRNGKey(0)
    # small activation: batch=2, seq=8, hidden=128
    x = jax.random.normal(key, (2, 8, 128), dtype=jnp.float32)

    rate = 0.5
    y = jax.block_until_ready(dropout_forward(x, dropout_rate=rate, training=True, seed=1234))
    assert y.shape == x.shape and y.dtype == x.dtype

    keep = 1.0 - rate
    zero_mask = (y == 0.0)
    expected = jnp.where(zero_mask, 0.0, x / keep)      # survivors equal x / keep_prob
    assert jnp.allclose(y, expected, rtol=1e-6, atol=1e-6)
    frac_dropped = float(zero_mask.mean())
    assert 0.3 < frac_dropped < 0.7, frac_dropped

    # eval mode is identity
    y_eval = jax.block_until_ready(dropout_forward(x, dropout_rate=rate, training=False))
    assert jnp.array_equal(y_eval, x)

    # p = 1.0 drops everything (PyTorch-compatible)
    y_all = jax.block_until_ready(dropout_forward(x, dropout_rate=1.0, training=True, seed=3))
    assert not bool(jnp.any(y_all))

    # bf16 smoke test (native-dtype scale/select path)
    xb = jax.random.normal(jax.random.PRNGKey(1), (2, 8, 256)).astype(jnp.bfloat16)
    yb = jax.block_until_ready(dropout_forward(xb, dropout_rate=0.25, training=True, seed=7))
    assert yb.shape == xb.shape and yb.dtype == xb.dtype
    zb = (yb == 0)
    exp_b = jnp.where(zb, 0.0, xb.astype(jnp.float32) / 0.75)
    assert jnp.allclose(yb.astype(jnp.float32), exp_b, rtol=2e-2, atol=1e-2)

    print("KERNEL_OK")
</pallas_src>

<mosaic_0001>
module attributes {stable_mosaic.version = 11 : i64} {
  func.func @kernel(%arg0: i32, %arg1: memref<1xi32, #tpu.memory_space<smem>>, %arg2: memref<8x128xf32, #tpu.memory_space<vmem>>, %arg3: memref<8x128xf32, #tpu.memory_space<vmem>>) attributes {dimension_semantics = [#tpu.dimension_semantics<parallel>], iteration_bounds = array<i64: 2>, scalar_prefetch = 1 : i64, scratch_operands = 0 : i64, tpu.core_type = #tpu.core_type<tc>, window_params = [{transform_indices = @transform_0, window_bounds = array<i64: 8, 128>}, {transform_indices = @transform_1, window_bounds = array<i64: 8, 128>}]} {
    %0 = tpu.iota {dimensions = array<i32: 0>} : vector<8x128xi32>
    %1 = tpu.iota {dimensions = array<i32: 1>} : vector<8x128xi32>
    %c1024_i32 = arith.constant 1024 : i32
    %2 = arith.muli %arg0, %c1024_i32 : i32
    %c128_i32 = arith.constant 128 : i32
    %3 = vector.broadcast %c128_i32 : i32 to vector<8x128xi32>
    %4 = arith.muli %0, %3 : vector<8x128xi32>
    %5 = vector.broadcast %2 : i32 to vector<8x128xi32>
    %6 = arith.addi %5, %4 : vector<8x128xi32>
    %7 = arith.addi %6, %1 : vector<8x128xi32>
    %c0 = arith.constant 0 : index
    %8 = memref.load %arg1[%c0] : memref<1xi32, #tpu.memory_space<smem>>
    %c-1640531527_i32 = arith.constant -1640531527 : i32
    %9 = arith.muli %8, %c-1640531527_i32 : i32
    %10 = vector.broadcast %9 : i32 to vector<8x128xi32>
    %11 = arith.xori %7, %10 : vector<8x128xi32>
    %c16_i32 = arith.constant 16 : i32
    %12 = vector.broadcast %c16_i32 : i32 to vector<8x128xi32>
    %13 = arith.shrui %11, %12 : vector<8x128xi32>
    %14 = arith.xori %11, %13 : vector<8x128xi32>
    %c2146121005_i32 = arith.constant 2146121005 : i32
    %15 = vector.broadcast %c2146121005_i32 : i32 to vector<8x128xi32>
    %16 = arith.muli %14, %15 : vector<8x128xi32>
    %c15_i32 = arith.constant 15 : i32
    %17 = vector.broadcast %c15_i32 : i32 to vector<8x128xi32>
    %18 = arith.shrui %16, %17 : vector<8x128xi32>
    %19 = arith.xori %16, %18 : vector<8x128xi32>
    %c-2073254261_i32 = arith.constant -2073254261 : i32
    %20 = vector.broadcast %c-2073254261_i32 : i32 to vector<8x128xi32>
    %21 = arith.muli %19, %20 : vector<8x128xi32>
    %c16_i32_0 = arith.constant 16 : i32
    %22 = vector.broadcast %c16_i32_0 : i32 to vector<8x128xi32>
    %23 = arith.shrui %21, %22 : vector<8x128xi32>
    %24 = arith.xori %21, %23 : vector<8x128xi32>
    %c-2147483648_i32 = arith.constant -2147483648 : i32
    %25 = vector.broadcast %c-2147483648_i32 : i32 to vector<8x128xi32>
    %26 = arith.cmpi ult, %24, %25 : vector<8x128xi32>
    %c0_1 = arith.constant 0 : index
    %c0_2 = arith.constant 0 : index
    %27 = vector.load %arg2[%c0_1, %c0_2] : memref<8x128xf32, #tpu.memory_space<vmem>>, vector<8x128xf32>
    %cst = arith.constant 2.000000e+00 : f32
    %28 = vector.broadcast %cst : f32 to vector<8x128xf32>
    %29 = arith.mulf %27, %28 : vector<8x128xf32>
    %cst_3 = arith.constant 0.000000e+00 : f32
    %30 = vector.broadcast %cst_3 : f32 to vector<8x128xf32>
    %31 = arith.select %26, %29, %30 : vector<8x128xi1>, vector<8x128xf32>
    %c0_4 = arith.constant 0 : index
    %c0_5 = arith.constant 0 : index
    %32 = vector.load %arg3[%c0_4, %c0_5] : memref<8x128xf32, #tpu.memory_space<vmem>>, vector<8x128xf32>
    tpu.vector_store %arg3[%c0_4, %c0_5], %31 {strides = array<i32>} : memref<8x128xf32, #tpu.memory_space<vmem>>, vector<8x128xf32>,
    return
  }
  func.func @transform_0(%arg0: i32, %arg1: memref<1xi32, #tpu.memory_space<smem>>) -> (i32, i32) {
    %c0_i32 = arith.constant 0 : i32
    %c0_i32_0 = arith.constant 0 : i32
    return %arg0, %c0_i32 : i32, i32
  }
  func.func @transform_1(%arg0: i32, %arg1: memref<1xi32, #tpu.memory_space<smem>>) -> (i32, i32) {
    %c0_i32 = arith.constant 0 : i32
    %c0_i32_0 = arith.constant 0 : i32
    return %arg0, %c0_i32 : i32, i32
  }
}

</mosaic_0001>

<bundles_post_ra>
// kernel: tpu_custom_call.1
= control target key start
LH: loop header
LB: loop body
LE: loop exit
PB: predicated region body
PF: predicated region fallthrough
CT: control target
= control target key end

     0   :  { %s583_s0 = inlined_call_operand.<no memory space> [shape: s32[1], index: 0, kind: input, shape index: {}]   ;;  %s584_s1 = inlined_call_operand.hbm [shape: f32[16,128], index: 1, kind: input, shape index: {}]   ;;  %s585_s2 = inlined_call_operand.hbm [shape: f32[16,128], index: 2, kind: output, shape index: {}]  }
   0x1   :  { %7 = sst [smem:[#allocation3]] %s583_s0 }
   0x2   :  { %8 = vsyncpa [#allocation5], 0 }
   0x3   :  { %10 = vsyncpa [#allocation5 + $0x1], 0 }
   0x4   :  { %11 = vsyncpa [#allocation6], 0 }
   0x5   :  { %13 = vsyncpa [#allocation6 + $0x1], 0  ;;  %s421_s11 = smov 0   ;;  %s423_s12 = smov 0  }
   0x6   :  { %s425_s13 = smov 0   ;;  %s427_s14 = smov 0  }
   0x7 LB: > { %s442_s0 = sadd.s32 4294967295, %s399_s14   ;;  %s244_s15 = sadd.s32 4294967294, %s399_s14   ;;  %s399_s14 = sphi %s427_s14, %s600_s14   ;;  %s395_s13 = sphi %s425_s13, %s599_s13   ;;  %s391_s12 = sphi %s423_s12, %s598_s12   ;;  %s387_s11 = sphi %s421_s11, %s597_s11  }
   0x8   : > { %s446_s16 = sadd.s32 1, %s399_s14   ;;  %s26_s17 = sadd.s32 1, %s395_s13 }
   0x9   : > { %s23_s18 = ssub.s32 %s399_s14, %s446_s16  ;;  %p33_p0 = scmp.ne.s32.totalorder %s395_s13, %s391_s12 }
   0xa   : > { %p24_p1 = scmp.eq.s32.totalorder %s23_s18, 0  ;;  %p34_p2 = scmp.eq.s32.totalorder %s399_s14, 0 }
   0xb   : > { %p39_p3 = scmp.ne.s32.totalorder %s391_s12, %s387_s11  ;;  %p40_p4 = scmp.eq.s32.totalorder %s442_s0, 0 }
   0xc   : > { %s458_s19 = scalar_select %p24_p1, %s395_s13, %s26_s17  }
   0xd   : > { %p460_p5 = por %p34_p2, %p33_p0  ;;  %p464_p6 = por %p40_p4, %p39_p3 }
   0xe   : > { %p63_p7 = scmp.eq.s32.totalorder %s442_s0, 1  ;;  %p69_p8 = scmp.eq.s32.totalorder %s244_s15, 1 }
   0xf   : > { %p269_p10 = scmp.lt.s32.totalorder %s399_s14, 2  ;;  %s89_s24 = sand.u32 1, %s395_s13  }
  0x10   : > { %p471_p11 = por %p63_p7, %p33_p0  ;;  %p475_p12 = por %p69_p8, %p39_p3 }
  0x11   : > { %s248_s25 = sshll.u32 %s399_s14, 7  ;;  %s247_s26 = sshll.u32 %s89_s24, 3 }
  0x12   : > { %s589_s22 = scalar_select %p471_p11, 1, 0 }
  0x13   : > { %s590_s23 = scalar_select %p475_p12, 1, 0 }
  0x14   : > { %s484_s29 = scalar_lea.hbm %s584_s1, %s248_s25  ;;  %s93_s30 = scalar_lea.vmem [#allocation4], %s247_s26 }
  0x15   : > { %s100_s3 = sshll.u32 %s93_s30, 4  ;;  %p488_p13 = pnand %p269_p10, %p460_p5  ;;  %s492_s3 = int_to_ptr.vmem [resolvable:$true] %s100_s3 }
  0x16   : > { %s90_s5 = scalar_lea.sflag [#allocation5], %s89_s24  ;;  %s303_s6 = scalar_lea.hbm %s484_s29, 128 }
  0x17   : > { %p304_p2 = scmp.ne.s32.totalorder %s484_s29, %s303_s6  ;;  %p305_p3 = pneg %p488_p13 }
  0x18   : > { %s308_s9 = scalar_lea.hbm %s584_s1, 256  ;;  %p309_p5 = scmp.lt.u32.totalorder %s484_s29, %s584_s1 }
  0x19   : > { %p306_p4 = pnand %p305_p3, %p304_p2  ;;  %p310_p8 = scmp.lt.u32.totalorder %s308_s9, %s303_s6 }
  0x1a   : > { %p312_p9 = scmp.lt.u32.totalorder %s303_s6, %s484_s29 }
  0x1b   : > { %p307_p7 = pneg %p306_p4  ;;  %p311_p10 = por %p310_p8, %p309_p5 }
  0x1d   : > { %p313_p0 = por %p312_p9, %p311_p10 }
  0x1f   : > { %p314_p1 = pnand %p313_p0, %p307_p7 }
  0x21   : > { %317 = shalt.err (!%p314_p1)
}
  0x22   : > { %s318_s17 = scalar_lea.vmem %s492_s3, 128  ;;  %s401_s18 = smov [#allocation4]  }
  0x23   : > { %p319_p2 = scmp.ne.s32.totalorder %s492_s3, %s318_s17  ;;  %s323_s20 = sshll.u32 %s401_s18, 4  ;;  %s324_s20 = int_to_ptr.vmem [resolvable:$false] %s323_s20 }
  0x24   : > { %s325_s24 = scalar_lea.vmem %s324_s20, 256  ;;  %p326_p11 = scmp.lt.s32.totalorder %s492_s3, %s324_s20 }
  0x25   : > { %p321_p4 = pnand %p319_p2, %p305_p3  ;;  %p327_p5 = scmp.lt.s32.totalorder %s325_s24, %s318_s17 }
  0x27   : > { %p322_p12 = pneg %p321_p4  ;;  %p328_p8 = por %p327_p5, %p326_p11 }
  0x29   : > { %p329_p9 = pnand %p328_p8, %p322_p12 }
  0x2b   : > { %332 = shalt.err (!%p329_p9)
}
  0x2c   : > { %264 = dma.hbm_to_vmem [thread:$0]  (!%p488_p13), %s484_s29, 128, %s492_s3, %s90_s5  }
  0x2d   : > { %p592_p0 = scmp.lt.s32.totalorder %s399_s14, 3  ;;  %p593_p1 = scmp.ge.s32.totalorder %s399_s14, 1 }
  0x2f   : > { %p106_p3 = pnand %p593_p1, %p592_p0 }
  0x30   : > { %s526_s25 = sand.u32 (!%p106_p3), 1, %s391_s12  }
  0x31   : > { %109 = sbr.rel (%p106_p3) target bundleno = 101 (0x65), region = 24  ;;  %s250_s26 = sshll.u32 (!%p106_p3), %s526_s25, 3 }
  0x32   : > { %s112_s27 = scalar_lea.sflag (!%p106_p3), [#allocation5], %s526_s25  ;;  %s115_s28 = scalar_lea.vmem (!%p106_p3), [#allocation4], %s250_s26 }
  0x38   : > { %378 = dma.done.wait (%p464_p6), %s112_s27, 128  }
  0x39   : > { %380 = vsyncadd (%p464_p6), %s112_s27, 4294967168  ;;  %v134_v0 = vlaneseq  ;;  %s252_s29 = sshll.u32 %s442_s0, 10  ;;  %s143_s30 = sld [smem:[#allocation3]]  ;;  %v156_v15 = vld [vmem:[%s115_s28] sm:$0xff] }
  0x3a   : > { %v140_v2 = vstv %s252_s29  ;;  %s133_s21 = scalar_lea.vmem [#allocation7], %s250_s26  ;;  %v157_v17 = vmul.f32 2.0, %v156_v15  ;;  %s254_s5 = sshll.u32 %s442_s0, 7 }
  0x3b   : > { %v135_v1 = vshrl.u32 %v134_v0, 7  ;;  %v137_v3 = vand.u32 127, %v134_v0  ;;  %s174_s4 = sshll.u32 %s133_s21, 4  ;;  %s541_s8 = scalar_lea.hbm %s585_s2, %s254_s5  ;;  %s536_s4 = int_to_ptr.vmem [resolvable:$true] %s174_s4 }
  0x3c   : > { %s161_s9 = scalar_lea.sflag [#allocation6], %s526_s25  ;;  %s333_s10 = scalar_lea.vmem %s536_s4, 128 }
  0x3d   : > { %v139_v4 = vmul.u32 128, %v135_v1  ;;  %p334_p6 = scmp.ne.s32.totalorder %s536_s4, %s333_s10  ;;  %p594_p11 = scmp.ne.s32.totalorder %s589_s22, 0 }
  0x3e   : > { %s402_s0 = smov [#allocation7]  }
  0x3f   : > { %v141_v5 = vadd.s32 %v140_v2, %v139_v4  ;;  %s144_s3 = smul.u32 2654435769, %s143_s30  ;;  %p335_p12 = pnand %p334_p6, %p594_p11 }
  0x40   : > { %s337_s15 = sshll.u32 %s402_s0, 4  ;;  %s338_s15 = int_to_ptr.vmem [resolvable:$false] %s337_s15 }
  0x41   : > { %v142_v6 = vadd.s32 %v141_v5, %v137_v3  ;;  %v145_v7 = vstv %s144_s3  ;;  %p336_p13 = pneg %p335_p12  ;;  %s339_s17 = scalar_lea.vmem %s338_s15, 256 }
  0x42   : > { %p340_p7 = scmp.lt.s32.totalorder %s536_s4, %s338_s15  ;;  %p341_p10 = scmp.lt.s32.totalorder %s339_s17, %s333_s10 }
  0x43   : > { %v146_v8 = vxor.u32 %v145_v7, %v142_v6 }
  0x44   : > { %p342_p2 = por %p341_p10, %p340_p7 }
  0x45   : > { %v147_v9 = vshrl.u32 %v146_v8, 16 }
  0x46   : > { %p343_p4 = pnand %p342_p2, %p336_p13 }
  0x47   : > { %v148_v10 = vxor.u32 %v147_v9, %v146_v8 }
  0x49   : > { %v149_v11 = vmul.u32 2146121005, %v148_v10 }
  0x4b   : > { %v150_v12 = vshrl.u32 %v149_v11, 15 }
  0x4d   : > { %v151_v13 = vxor.u32 %v150_v12, %v149_v11 }
  0x4f   : > { %v152_v14 = vmul.u32 2221713035, %v151_v13 }
  0x51   : > { %v153_v16 = vshrl.u32 %v152_v14, 16 }
  0x53   : > { %v154_v18 = vxor.u32 %v153_v16, %v152_v14 }
  0x55   : > { %vm155_vm0 = vcmp.lt.u32.totalorder %v154_v18, 2147483648 }
  0x56   : > { %v158_v19 = vsel %vm155_vm0, %v157_v17, 0.0 }
  0x57   : > { %159 = vst [vmem:[%s133_s21] sm:$0xff] %v158_v19 }
  0x58   : > { %346 = shalt.err (!%p343_p4)
}
  0x59   : > { %s347_s18 = scalar_lea.hbm %s541_s8, 128  ;;  %s351_s25 = scalar_lea.hbm %s585_s2, 256 }
  0x5a   : > { %p348_p5 = scmp.ne.s32.totalorder %s541_s8, %s347_s18  ;;  %p352_p0 = scmp.lt.u32.totalorder %s541_s8, %s585_s2 }
  0x5b   : > { %p353_p1 = scmp.lt.u32.totalorder %s351_s25, %s347_s18  ;;  %p355_p6 = scmp.lt.u32.totalorder %s347_s18, %s541_s8 }
  0x5c   : > { %p349_p8 = pnand %p348_p5, %p594_p11 }
  0x5d   : > { %p354_p3 = por %p353_p1, %p352_p0 }
  0x5e   : > { %p350_p9 = pneg %p349_p8 }
  0x5f   : > { %p356_p12 = por %p355_p6, %p354_p3 }
  0x61   : > { %p357_p13 = pnand %p356_p12, %p350_p9 }
  0x63   : > { %360 = shalt.err (!%p357_p13)
}
  0x64   : > { %259 = dma.vmem_to_hbm [thread:$0]  (%p594_p11), %s536_s4, 128, %s541_s8, %s161_s9  }
  0x65 PF: > { %s186_s28 = sand.u32 1, %s387_s11   ;;  %p595_p7 = scmp.ne.s32.totalorder %s590_s23, 0 }
  0x66   : > { %p596_p10 = scmp.ge.s32.totalorder %s399_s14, 2  ;;  %s187_s29 = scalar_lea.sflag [#allocation6], %s186_s28 }
  0x68   : > { %p266_p2 = pnand %p596_p10, %p595_p7 }
  0x6a   : > { %382 = dma.done.wait (!%p266_p2), %s187_s29, 128  }
  0x6b   : > { %384 = vsyncadd (!%p266_p2), %s187_s29, 4294967168  ;;  %p16_p4 = scmp.ge.s32.totalorder %s446_s16, 4   ;;  %s597_s11 = smov %s391_s12 }
  0x6c   : > { %s598_s12 = smov %s395_s13  ;;  %s599_s13 = smov %s458_s19 }
  0x6d   : > { %s600_s14 = smov %s446_s16  ;;  %18 = sbr.rel (!%p16_p4) target bundleno = 7 (0x7), region = 69 }
  0x74   :  { %192 = vsyncpa [#allocation5], 1 }
  0x75   :  { %194 = vsyncpa [#allocation5 + $0x1], 1 }
  0x76   :  { %195 = vsyncpa [#allocation6], 1 }
  0x77   :  { %197 = vsyncpa [#allocation6 + $0x1], 1 }

</bundles_post_ra>
